<compile_context>
chip_gen: v7x
topology: tpu7x:2x2x1
jax: 0.10.0
libtpu: 0.0.40
codegen_flags: <defaults>
</compile_context>

<pallas_src>
import functools
import math

import jax
import jax.numpy as jnp
import numpy as np
from jax import lax
from jax.experimental import pallas as pl
from jax.experimental.pallas import tpu as pltpu

LOGIT_SCALE_INIT = math.log(1.0 / 0.07)
LOGIT_SCALE_MIN = math.log(1.0)     # ln(1)
LOGIT_SCALE_MAX = math.log(100.0)   # ln(100)


def _contrastive_loss_kernel(scale_ref, a_ref, b_ref, loss_ref,
                             m_r_ref, s_r_ref, m_c_ref, s_c_ref, acc_ref,
                             *, n_total):
    # scale_ref: SMEM (1,) f32     -- log temperature parameter
    # a_ref:     VMEM (T, D)       -- row tile of embeddings_a   (native dtype)
    # b_ref:     VMEM (T, D)       -- row tile of embeddings_b == column tile of logits
    # loss_ref:  VMEM (1, 1) f32   -- scalar loss output (written at last step)
    # m_r/s_r:   VMEM (T, 1) f32   -- row-direction online max / sum-exp
    # m_c/s_c:   VMEM (NJ,1,T) f32 -- column-direction online max / sum-exp per col tile
    # acc_ref:   VMEM (1, 1) f32   -- running scalar accumulator
    i = pl.program_id(0)           # row-tile index (outer)
    j = pl.program_id(1)           # col-tile index (inner)
    ni = pl.num_programs(0)
    nj = pl.num_programs(1)

    scale = jnp.clip(scale_ref[0], LOGIT_SCALE_MIN, LOGIT_SCALE_MAX)
    temperature = jnp.exp(scale)

    a = a_ref[...]                 # (T, D) native dtype -> MXU directly
    b = b_ref[...]                 # (T, D)

    # NT contraction: contract the feature dims, no transpose materialized.
    logits = lax.dot_general(a, b, (((1,), (1,)), ((), ())),
                             preferred_element_type=jnp.float32)
    logits = logits * temperature  # scale once, in f32

    # ---- init running scalar accumulator ------------------------------------
    @pl.when(jnp.logical_and(i == 0, j == 0))
    def _():
        acc_ref[...] = jnp.zeros_like(acc_ref)

    # ---- row direction (loss_a): online LSE across the inner (j) axis -------
    @pl.when(j == 0)
    def _():
        m_r_ref[...] = jnp.full_like(m_r_ref, -jnp.inf)
        s_r_ref[...] = jnp.zeros_like(s_r_ref)

    m_r_old = m_r_ref[...]
    m_r_new = jnp.maximum(m_r_old, jnp.max(logits, axis=1, keepdims=True))
    alpha = jnp.exp(m_r_old - m_r_new)
    p_r = jnp.exp(logits - m_r_new)
    s_r_ref[...] = alpha * s_r_ref[...] + jnp.sum(p_r, axis=1, keepdims=True)
    m_r_ref[...] = m_r_new

    @pl.when(j == nj - 1)
    def _():
        lse_rows = jnp.sum(m_r_ref[...] + jnp.log(s_r_ref[...]), keepdims=True)
        acc_ref[...] = acc_ref[...] + lse_rows

    # ---- column direction (loss_b): online LSE across the outer (i) axis ----
    @pl.when(i == 0)
    def _():
        m_c_ref[j] = jnp.full(m_c_ref.shape[1:], -jnp.inf, jnp.float32)
        s_c_ref[j] = jnp.zeros(s_c_ref.shape[1:], jnp.float32)

    m_c_old = m_c_ref[j]
    m_c_new = jnp.maximum(m_c_old, jnp.max(logits, axis=0, keepdims=True))
    beta = jnp.exp(m_c_old - m_c_new)
    p_c = jnp.exp(logits - m_c_new)
    s_c_ref[j] = beta * s_c_ref[j] + jnp.sum(p_c, axis=0, keepdims=True)
    m_c_ref[j] = m_c_new

    @pl.when(i == ni - 1)
    def _():
        lse_cols = jnp.sum(m_c_ref[j] + jnp.log(s_c_ref[j]), keepdims=True)
        acc_ref[...] = acc_ref[...] + lse_cols

    # ---- diagonal (target logits) -- only on diagonal tiles ------------------
    # labels = arange(n); the target logit is shared by both directions, hence -2x.
    @pl.when(i == j)
    def _():
        d = jnp.sum(a.astype(jnp.float32) * b.astype(jnp.float32), keepdims=True)
        acc_ref[...] = acc_ref[...] + (-2.0 * temperature) * d

    # ---- finalize -------------------------------------------------------------
    @pl.when(jnp.logical_and(i == ni - 1, j == nj - 1))
    def _():
        loss_ref[...] = (0.5 / n_total) * acc_ref[...]


def contrastive_loss_with_temperature(embeddings_a, embeddings_b, logit_scale,
                                      *, block_size=None):
    """embeddings_a/b: [B, D]; logit_scale: scalar param (log temperature)."""
    B, D = embeddings_a.shape
    assert embeddings_b.shape == (B, D)

    if block_size is None:
        # 256-multiples match the v6e/v7x 2x256^2 MXU and are 128-multiples for
        # v5e; fall back to a single tile for small / odd batch sizes.
        block_size = next((t for t in (256, 128) if B % t == 0), B)
    T = block_size
    assert B % T == 0, "batch must be divisible by the tile size"
    nt = B // T

    scale = jnp.asarray(logit_scale, jnp.float32).reshape((1,))

    # VMEM budget: double-buffered A/B tiles + f32 logits/exp temporaries + scratch.
    itemsize = jnp.dtype(embeddings_a.dtype).itemsize
    est = (4 * T * D * itemsize            # 2 inputs x 2 buffers
           + 8 * T * T * 4                 # logits + exp temporaries (f32)
           + 2 * T * 128 * 4               # m_r, s_r (lane-padded)
           + 2 * nt * 8 * max(T, 128) * 4  # m_c, s_c (sublane/lane-padded)
           + (4 << 20))                    # slack
    vmem_limit = int(min(max(est, 32 << 20), 64 << 20))

    loss = pl.pallas_call(
        functools.partial(_contrastive_loss_kernel, n_total=B),
        out_shape=jax.ShapeDtypeStruct((1, 1), jnp.float32),
        grid_spec=pltpu.PrefetchScalarGridSpec(
            num_scalar_prefetch=0,
            grid=(nt, nt),                       # (row tiles, col tiles); col inner
            in_specs=[
                pl.BlockSpec(memory_space=pltpu.MemorySpace.SMEM),
                pl.BlockSpec((T, D), lambda i, j: (i, 0)),   # A row tile (resident over j)
                pl.BlockSpec((T, D), lambda i, j: (j, 0)),   # B row tile (streamed)
            ],
            out_specs=pl.BlockSpec((1, 1), lambda i, j: (0, 0)),
            scratch_shapes=[
                pltpu.VMEM((T, 1), jnp.float32),       # m_r
                pltpu.VMEM((T, 1), jnp.float32),       # s_r
                pltpu.VMEM((nt, 1, T), jnp.float32),   # m_c (per column tile)
                pltpu.VMEM((nt, 1, T), jnp.float32),   # s_c (per column tile)
                pltpu.VMEM((1, 1), jnp.float32),       # scalar accumulator
            ],
        ),
        compiler_params=pltpu.CompilerParams(
            # Both axes accumulate into persistent scratch (column stats cross the
            # row axis), so they must stay sequential on a single core.
            dimension_semantics=("arbitrary", "arbitrary"),
            vmem_limit_bytes=vmem_limit,
        ),
    )(scale, embeddings_a, embeddings_b)
    return loss[0, 0]


def _reference_loss(a, b, logit_scale):
    temp = jnp.exp(jnp.clip(logit_scale, LOGIT_SCALE_MIN, LOGIT_SCALE_MAX))
    logits_a = (a @ b.T) * temp
    logits_b = (b @ a.T) * temp
    labels = jnp.arange(a.shape[0])

    def ce(logits):
        lse = jax.nn.logsumexp(logits, axis=1)
        tgt = logits[jnp.arange(logits.shape[0]), labels]
        return jnp.mean(lse - tgt)

    return 0.5 * (ce(logits_a) + ce(logits_b))


# TODO(synk): distributed all-gather (BackpropType), the optional `mask`, and
# cross_entropy_kwargs (e.g. label_smoothing) from the PyTorch module are not
# implemented; this covers the default single-device forward path.

if __name__ == "__main__":
    key = jax.random.PRNGKey(0)
    ka, kb = jax.random.split(key)
    B, D = 16, 32
    embeddings_a = jax.random.normal(ka, (B, D), dtype=jnp.float32)
    embeddings_b = jax.random.normal(kb, (B, D), dtype=jnp.float32)
    logit_scale = jnp.float32(LOGIT_SCALE_INIT)  # deterministic param init

    # block_size=8 -> a 2x2 grid of logits tiles, exercising the online
    # row/column LSE accumulators at a small, fast test size.
    loss = contrastive_loss_with_temperature(
        embeddings_a, embeddings_b, logit_scale, block_size=8)
    loss = jax.block_until_ready(loss)

    ref = jax.block_until_ready(
        _reference_loss(embeddings_a, embeddings_b, logit_scale))
    assert np.allclose(np.asarray(loss), np.asarray(ref),
                       rtol=1e-4, atol=1e-4), (loss, ref)
    print("KERNEL_OK")
</pallas_src>

<mosaic_0001>
module attributes {stable_mosaic.version = 11 : i64} {
  func.func @_contrastive_loss_kernel(%arg0: i32, %arg1: i32, %arg2: memref<1xf32, #tpu.memory_space<smem>>, %arg3: memref<8x32xf32, #tpu.memory_space<vmem>>, %arg4: memref<8x32xf32, #tpu.memory_space<vmem>>, %arg5: memref<1x1xf32, #tpu.memory_space<vmem>>, %arg6: memref<8x1xf32, #tpu.memory_space<vmem>>, %arg7: memref<8x1xf32, #tpu.memory_space<vmem>>, %arg8: memref<2x1x8xf32, #tpu.memory_space<vmem>>, %arg9: memref<2x1x8xf32, #tpu.memory_space<vmem>>, %arg10: memref<1x1xf32, #tpu.memory_space<vmem>>) attributes {dimension_semantics = [#tpu.dimension_semantics<arbitrary>, #tpu.dimension_semantics<arbitrary>], iteration_bounds = array<i64: 2, 2>, scalar_prefetch = 0 : i64, scratch_operands = 5 : i64, tpu.core_type = #tpu.core_type<tc>, window_params = [{transform_indices = @transform_0, window_bounds = array<i64: 1>}, {transform_indices = @transform_1, window_bounds = array<i64: 8, 32>}, {transform_indices = @transform_2, window_bounds = array<i64: 8, 32>}, {pipeline_mode = #tpu.pipeline_mode<synchronous>, transform_indices = @transform_3, window_bounds = array<i64: 1, 1>}]} {
    %c0 = arith.constant 0 : index
    %0 = memref.load %arg2[%c0] : memref<1xf32, #tpu.memory_space<smem>>
    %cst = arith.constant 0.000000e+00 : f32
    %cst_0 = arith.constant 4.60517025 : f32
    %1 = arith.maximumf %cst, %0 : f32
    %2 = arith.minimumf %cst_0, %1 : f32
    %3 = math.exp %2 : f32
    %c0_1 = arith.constant 0 : index
    %c0_2 = arith.constant 0 : index
    %4 = vector.load %arg3[%c0_1, %c0_2] : memref<8x32xf32, #tpu.memory_space<vmem>>, vector<8x32xf32>
    %c0_3 = arith.constant 0 : index
    %c0_4 = arith.constant 0 : index
    %5 = vector.load %arg4[%c0_3, %c0_4] : memref<8x32xf32, #tpu.memory_space<vmem>>, vector<8x32xf32>
    %cst_5 = arith.constant dense<0.000000e+00> : vector<8x8xf32>
    %6 = tpu.matmul %4, %5, %cst_5 {dimension_numbers = #tpu.dot_dimension_numbers<[1], [1], [0], [0], [0, 0, 1, 0], [], []>} : vector<8x32xf32>, vector<8x32xf32>, vector<8x8xf32> -> vector<8x8xf32>
    %7 = vector.broadcast %3 : f32 to vector<8x8xf32>
    %8 = arith.mulf %6, %7 : vector<8x8xf32>
    %c0_i32 = arith.constant 0 : i32
    %9 = arith.cmpi eq, %arg0, %c0_i32 : i32
    %c0_i32_6 = arith.constant 0 : i32
    %10 = arith.cmpi eq, %arg1, %c0_i32_6 : i32
    %11 = arith.andi %9, %10 : i1
    %12 = arith.extui %11 : i1 to i32
    %c0_i32_7 = arith.constant 0 : i32
    %13 = arith.cmpi ne, %12, %c0_i32_7 : i32
    scf.if %13 {
      %cst_39 = arith.constant 0.000000e+00 : f32
      %76 = vector.broadcast %cst_39 : f32 to vector<1x1xf32>
      %c0_40 = arith.constant 0 : index
      %c0_41 = arith.constant 0 : index
      %77 = vector.load %arg10[%c0_40, %c0_41] : memref<1x1xf32, #tpu.memory_space<vmem>>, vector<1x1xf32>
      tpu.vector_store %arg10[%c0_40, %c0_41], %76 {strides = array<i32>} : memref<1x1xf32, #tpu.memory_space<vmem>>, vector<1x1xf32>,
    } else {
    }
    %c0_i32_8 = arith.constant 0 : i32
    %14 = arith.cmpi eq, %arg1, %c0_i32_8 : i32
    %15 = arith.extui %14 : i1 to i32
    %c0_i32_9 = arith.constant 0 : i32
    %16 = arith.cmpi ne, %15, %c0_i32_9 : i32
    scf.if %16 {
      %cst_39 = arith.constant 0xFF800000 : f32
      %76 = vector.broadcast %cst_39 : f32 to vector<8x1xf32>
      %c0_40 = arith.constant 0 : index
      %c0_41 = arith.constant 0 : index
      %77 = vector.load %arg6[%c0_40, %c0_41] : memref<8x1xf32, #tpu.memory_space<vmem>>, vector<8x1xf32>
      tpu.vector_store %arg6[%c0_40, %c0_41], %76 {strides = array<i32>} : memref<8x1xf32, #tpu.memory_space<vmem>>, vector<8x1xf32>,
      %cst_42 = arith.constant 0.000000e+00 : f32
      %78 = vector.broadcast %cst_42 : f32 to vector<8x1xf32>
      %c0_43 = arith.constant 0 : index
      %c0_44 = arith.constant 0 : index
      %79 = vector.load %arg7[%c0_43, %c0_44] : memref<8x1xf32, #tpu.memory_space<vmem>>, vector<8x1xf32>
      tpu.vector_store %arg7[%c0_43, %c0_44], %78 {strides = array<i32>} : memref<8x1xf32, #tpu.memory_space<vmem>>, vector<8x1xf32>,
    } else {
    }
    %c0_10 = arith.constant 0 : index
    %c0_11 = arith.constant 0 : index
    %17 = vector.load %arg6[%c0_10, %c0_11] : memref<8x1xf32, #tpu.memory_space<vmem>>, vector<8x1xf32>
    %cst_12 = arith.constant dense<0xFF800000> : vector<8xf32>
    %18 = vector.multi_reduction <maximumf>, %8, %cst_12 [1] : vector<8x8xf32> to vector<8xf32>
    %19 = vector.shape_cast %18 : vector<8xf32> to vector<8x1xf32>
    %20 = arith.maximumf %17, %19 : vector<8x1xf32>
    %21 = arith.subf %17, %20 : vector<8x1xf32>
    %22 = math.exp %21 : vector<8x1xf32>
    %23 = vector.broadcast %20 : vector<8x1xf32> to vector<8x8xf32>
    %24 = arith.subf %8, %23 : vector<8x8xf32>
    %25 = math.exp %24 : vector<8x8xf32>
    %c0_13 = arith.constant 0 : index
    %c0_14 = arith.constant 0 : index
    %26 = vector.load %arg7[%c0_13, %c0_14] : memref<8x1xf32, #tpu.memory_space<vmem>>, vector<8x1xf32>
    %27 = arith.mulf %22, %26 : vector<8x1xf32>
    %cst_15 = arith.constant dense<0.000000e+00> : vector<8xf32>
    %28 = vector.multi_reduction <add>, %25, %cst_15 [1] : vector<8x8xf32> to vector<8xf32>
    %29 = vector.shape_cast %28 : vector<8xf32> to vector<8x1xf32>
    %30 = arith.addf %27, %29 : vector<8x1xf32>
    %c0_16 = arith.constant 0 : index
    %c0_17 = arith.constant 0 : index
    %31 = vector.load %arg7[%c0_16, %c0_17] : memref<8x1xf32, #tpu.memory_space<vmem>>, vector<8x1xf32>
    tpu.vector_store %arg7[%c0_16, %c0_17], %30 {strides = array<i32>} : memref<8x1xf32, #tpu.memory_space<vmem>>, vector<8x1xf32>,
    %c0_18 = arith.constant 0 : index
    %c0_19 = arith.constant 0 : index
    %32 = vector.load %arg6[%c0_18, %c0_19] : memref<8x1xf32, #tpu.memory_space<vmem>>, vector<8x1xf32>
    tpu.vector_store %arg6[%c0_18, %c0_19], %20 {strides = array<i32>} : memref<8x1xf32, #tpu.memory_space<vmem>>, vector<8x1xf32>,
    %c1_i32 = arith.constant 1 : i32
    %33 = arith.cmpi eq, %arg1, %c1_i32 : i32
    %34 = arith.extui %33 : i1 to i32
    %c0_i32_20 = arith.constant 0 : i32
    %35 = arith.cmpi ne, %34, %c0_i32_20 : i32
    scf.if %35 {
      %c0_39 = arith.constant 0 : index
      %c0_40 = arith.constant 0 : index
      %76 = vector.load %arg6[%c0_39, %c0_40] : memref<8x1xf32, #tpu.memory_space<vmem>>, vector<8x1xf32>
      %c0_41 = arith.constant 0 : index
      %c0_42 = arith.constant 0 : index
      %77 = vector.load %arg7[%c0_41, %c0_42] : memref<8x1xf32, #tpu.memory_space<vmem>>, vector<8x1xf32>
      %78 = math.log %77 : vector<8x1xf32>
      %79 = arith.addf %76, %78 : vector<8x1xf32>
      %80 = vector.shape_cast %79 : vector<8x1xf32> to vector<1x8x1xf32>
      %cst_43 = arith.constant dense<0.000000e+00> : vector<1xf32>
      %81 = vector.multi_reduction <add>, %80, %cst_43 [1, 2] : vector<1x8x1xf32> to vector<1xf32>
      %82 = vector.shape_cast %81 : vector<1xf32> to vector<1x1x1xf32>
      %83 = vector.extract %82[0, 0, 0] : f32 from vector<1x1x1xf32>
      %84 = vector.broadcast %83 : f32 to vector<1x1xf32>
      %c0_44 = arith.constant 0 : index
      %c0_45 = arith.constant 0 : index
      %85 = vector.load %arg10[%c0_44, %c0_45] : memref<1x1xf32, #tpu.memory_space<vmem>>, vector<1x1xf32>
      %86 = arith.addf %85, %84 : vector<1x1xf32>
      %c0_46 = arith.constant 0 : index
      %c0_47 = arith.constant 0 : index
      %87 = vector.load %arg10[%c0_46, %c0_47] : memref<1x1xf32, #tpu.memory_space<vmem>>, vector<1x1xf32>
      tpu.vector_store %arg10[%c0_46, %c0_47], %86 {strides = array<i32>} : memref<1x1xf32, #tpu.memory_space<vmem>>, vector<1x1xf32>,
    } else {
    }
    %c0_i32_21 = arith.constant 0 : i32
    %36 = arith.cmpi eq, %arg0, %c0_i32_21 : i32
    %37 = arith.extui %36 : i1 to i32
    %c0_i32_22 = arith.constant 0 : i32
    %38 = arith.cmpi ne, %37, %c0_i32_22 : i32
    scf.if %38 {
      %cst_39 = arith.constant 0xFF800000 : f32
      %76 = vector.broadcast %cst_39 : f32 to vector<1x8xf32>
      %77 = arith.index_cast %arg1 : i32 to index
      %c0_40 = arith.constant 0 : index
      %c0_41 = arith.constant 0 : index
      %78 = vector.load %arg8[%77, %c0_40, %c0_41] : memref<2x1x8xf32, #tpu.memory_space<vmem>>, vector<1x1x8xf32>
      %79 = vector.shape_cast %78 : vector<1x1x8xf32> to vector<1x8xf32>
      %80 = vector.shape_cast %76 : vector<1x8xf32> to vector<1x1x8xf32>
      tpu.vector_store %arg8[%77, %c0_40, %c0_41], %80 {strides = array<i32>} : memref<2x1x8xf32, #tpu.memory_space<vmem>>, vector<1x1x8xf32>,
      %cst_42 = arith.constant 0.000000e+00 : f32
      %81 = vector.broadcast %cst_42 : f32 to vector<1x8xf32>
      %82 = arith.index_cast %arg1 : i32 to index
      %c0_43 = arith.constant 0 : index
      %c0_44 = arith.constant 0 : index
      %83 = vector.load %arg9[%82, %c0_43, %c0_44] : memref<2x1x8xf32, #tpu.memory_space<vmem>>, vector<1x1x8xf32>
      %84 = vector.shape_cast %83 : vector<1x1x8xf32> to vector<1x8xf32>
      %85 = vector.shape_cast %81 : vector<1x8xf32> to vector<1x1x8xf32>
      tpu.vector_store %arg9[%82, %c0_43, %c0_44], %85 {strides = array<i32>} : memref<2x1x8xf32, #tpu.memory_space<vmem>>, vector<1x1x8xf32>,
    } else {
    }
    %39 = arith.index_cast %arg1 : i32 to index
    %c0_23 = arith.constant 0 : index
    %c0_24 = arith.constant 0 : index
    %40 = vector.load %arg8[%39, %c0_23, %c0_24] : memref<2x1x8xf32, #tpu.memory_space<vmem>>, vector<1x1x8xf32>
    %41 = vector.shape_cast %40 : vector<1x1x8xf32> to vector<1x8xf32>
    %cst_25 = arith.constant dense<0xFF800000> : vector<8xf32>
    %42 = vector.multi_reduction <maximumf>, %8, %cst_25 [0] : vector<8x8xf32> to vector<8xf32>
    %43 = vector.shape_cast %42 : vector<8xf32> to vector<1x8xf32>
    %44 = arith.maximumf %41, %43 : vector<1x8xf32>
    %45 = arith.subf %41, %44 : vector<1x8xf32>
    %46 = math.exp %45 : vector<1x8xf32>
    %47 = vector.broadcast %44 : vector<1x8xf32> to vector<8x8xf32>
    %48 = arith.subf %8, %47 : vector<8x8xf32>
    %49 = math.exp %48 : vector<8x8xf32>
    %50 = arith.index_cast %arg1 : i32 to index
    %c0_26 = arith.constant 0 : index
    %c0_27 = arith.constant 0 : index
    %51 = vector.load %arg9[%50, %c0_26, %c0_27] : memref<2x1x8xf32, #tpu.memory_space<vmem>>, vector<1x1x8xf32>
    %52 = vector.shape_cast %51 : vector<1x1x8xf32> to vector<1x8xf32>
    %53 = arith.mulf %46, %52 : vector<1x8xf32>
    %cst_28 = arith.constant dense<0.000000e+00> : vector<8xf32>
    %54 = vector.multi_reduction <add>, %49, %cst_28 [0] : vector<8x8xf32> to vector<8xf32>
    %55 = vector.shape_cast %54 : vector<8xf32> to vector<1x8xf32>
    %56 = arith.addf %53, %55 : vector<1x8xf32>
    %57 = arith.index_cast %arg1 : i32 to index
    %c0_29 = arith.constant 0 : index
    %c0_30 = arith.constant 0 : index
    %58 = vector.load %arg9[%57, %c0_29, %c0_30] : memref<2x1x8xf32, #tpu.memory_space<vmem>>, vector<1x1x8xf32>
    %59 = vector.shape_cast %58 : vector<1x1x8xf32> to vector<1x8xf32>
    %60 = vector.shape_cast %56 : vector<1x8xf32> to vector<1x1x8xf32>
    tpu.vector_store %arg9[%57, %c0_29, %c0_30], %60 {strides = array<i32>} : memref<2x1x8xf32, #tpu.memory_space<vmem>>, vector<1x1x8xf32>,
    %61 = arith.index_cast %arg1 : i32 to index
    %c0_31 = arith.constant 0 : index
    %c0_32 = arith.constant 0 : index
    %62 = vector.load %arg8[%61, %c0_31, %c0_32] : memref<2x1x8xf32, #tpu.memory_space<vmem>>, vector<1x1x8xf32>
    %63 = vector.shape_cast %62 : vector<1x1x8xf32> to vector<1x8xf32>
    %64 = vector.shape_cast %44 : vector<1x8xf32> to vector<1x1x8xf32>
    tpu.vector_store %arg8[%61, %c0_31, %c0_32], %64 {strides = array<i32>} : memref<2x1x8xf32, #tpu.memory_space<vmem>>, vector<1x1x8xf32>,
    %c1_i32_33 = arith.constant 1 : i32
    %65 = arith.cmpi eq, %arg0, %c1_i32_33 : i32
    %66 = arith.extui %65 : i1 to i32
    %c0_i32_34 = arith.constant 0 : i32
    %67 = arith.cmpi ne, %66, %c0_i32_34 : i32
    scf.if %67 {
      %76 = arith.index_cast %arg1 : i32 to index
      %c0_39 = arith.constant 0 : index
      %c0_40 = arith.constant 0 : index
      %77 = vector.load %arg8[%76, %c0_39, %c0_40] : memref<2x1x8xf32, #tpu.memory_space<vmem>>, vector<1x1x8xf32>
      %78 = vector.shape_cast %77 : vector<1x1x8xf32> to vector<1x8xf32>
      %79 = arith.index_cast %arg1 : i32 to index
      %c0_41 = arith.constant 0 : index
      %c0_42 = arith.constant 0 : index
      %80 = vector.load %arg9[%79, %c0_41, %c0_42] : memref<2x1x8xf32, #tpu.memory_space<vmem>>, vector<1x1x8xf32>
      %81 = vector.shape_cast %80 : vector<1x1x8xf32> to vector<1x8xf32>
      %82 = math.log %81 : vector<1x8xf32>
      %83 = arith.addf %78, %82 : vector<1x8xf32>
      %84 = vector.shape_cast %83 : vector<1x8xf32> to vector<1x1x8xf32>
      %cst_43 = arith.constant dense<0.000000e+00> : vector<1xf32>
      %85 = vector.multi_reduction <add>, %84, %cst_43 [1, 2] : vector<1x1x8xf32> to vector<1xf32>
      %86 = vector.shape_cast %85 : vector<1xf32> to vector<1x1x1xf32>
      %87 = vector.extract %86[0, 0, 0] : f32 from vector<1x1x1xf32>
      %88 = vector.broadcast %87 : f32 to vector<1x1xf32>
      %c0_44 = arith.constant 0 : index
      %c0_45 = arith.constant 0 : index
      %89 = vector.load %arg10[%c0_44, %c0_45] : memref<1x1xf32, #tpu.memory_space<vmem>>, vector<1x1xf32>
      %90 = arith.addf %89, %88 : vector<1x1xf32>
      %c0_46 = arith.constant 0 : index
      %c0_47 = arith.constant 0 : index
      %91 = vector.load %arg10[%c0_46, %c0_47] : memref<1x1xf32, #tpu.memory_space<vmem>>, vector<1x1xf32>
      tpu.vector_store %arg10[%c0_46, %c0_47], %90 {strides = array<i32>} : memref<1x1xf32, #tpu.memory_space<vmem>>, vector<1x1xf32>,
    } else {
    }
    %68 = arith.cmpi eq, %arg0, %arg1 : i32
    %69 = arith.extui %68 : i1 to i32
    %c0_i32_35 = arith.constant 0 : i32
    %70 = arith.cmpi ne, %69, %c0_i32_35 : i32
    scf.if %70 {
      %76 = arith.mulf %4, %5 : vector<8x32xf32>
      %77 = vector.shape_cast %76 : vector<8x32xf32> to vector<1x8x32xf32>
      %cst_39 = arith.constant dense<0.000000e+00> : vector<1xf32>
      %78 = vector.multi_reduction <add>, %77, %cst_39 [1, 2] : vector<1x8x32xf32> to vector<1xf32>
      %79 = vector.shape_cast %78 : vector<1xf32> to vector<1x1x1xf32>
      %80 = vector.extract %79[0, 0, 0] : f32 from vector<1x1x1xf32>
      %81 = vector.broadcast %80 : f32 to vector<1x1xf32>
      %c0_40 = arith.constant 0 : index
      %c0_41 = arith.constant 0 : index
      %82 = vector.load %arg10[%c0_40, %c0_41] : memref<1x1xf32, #tpu.memory_space<vmem>>, vector<1x1xf32>
      %cst_42 = arith.constant -2.000000e+00 : f32
      %83 = arith.mulf %cst_42, %3 : f32
      %84 = vector.broadcast %83 : f32 to vector<1x1xf32>
      %85 = arith.mulf %84, %81 : vector<1x1xf32>
      %86 = arith.addf %82, %85 : vector<1x1xf32>
      %c0_43 = arith.constant 0 : index
      %c0_44 = arith.constant 0 : index
      %87 = vector.load %arg10[%c0_43, %c0_44] : memref<1x1xf32, #tpu.memory_space<vmem>>, vector<1x1xf32>
      tpu.vector_store %arg10[%c0_43, %c0_44], %86 {strides = array<i32>} : memref<1x1xf32, #tpu.memory_space<vmem>>, vector<1x1xf32>,
    } else {
    }
    %c1_i32_36 = arith.constant 1 : i32
    %71 = arith.cmpi eq, %arg0, %c1_i32_36 : i32
    %c1_i32_37 = arith.constant 1 : i32
    %72 = arith.cmpi eq, %arg1, %c1_i32_37 : i32
    %73 = arith.andi %71, %72 : i1
    %74 = arith.extui %73 : i1 to i32
    %c0_i32_38 = arith.constant 0 : i32
    %75 = arith.cmpi ne, %74, %c0_i32_38 : i32
    scf.if %75 {
      %c0_39 = arith.constant 0 : index
      %c0_40 = arith.constant 0 : index
      %76 = vector.load %arg10[%c0_39, %c0_40] : memref<1x1xf32, #tpu.memory_space<vmem>>, vector<1x1xf32>
      %cst_41 = arith.constant 3.125000e-02 : f32
      %77 = vector.broadcast %cst_41 : f32 to vector<1x1xf32>
      %78 = arith.mulf %77, %76 : vector<1x1xf32>
      %c0_42 = arith.constant 0 : index
      %c0_43 = arith.constant 0 : index
      %79 = vector.load %arg5[%c0_42, %c0_43] : memref<1x1xf32, #tpu.memory_space<vmem>>, vector<1x1xf32>
      tpu.vector_store %arg5[%c0_42, %c0_43], %78 {strides = array<i32>} : memref<1x1xf32, #tpu.memory_space<vmem>>, vector<1x1xf32>,
    } else {
    }
    return
  }
  func.func @transform_0(%arg0: i32, %arg1: i32) -> i32 {
    %c0_i32 = arith.constant 0 : i32
    %c0_i32_0 = arith.constant 0 : i32
    return %c0_i32 : i32
  }
  func.func @transform_1(%arg0: i32, %arg1: i32) -> (i32, i32) {
    %c0_i32 = arith.constant 0 : i32
    %c0_i32_0 = arith.constant 0 : i32
    return %arg0, %c0_i32 : i32, i32
  }
  func.func @transform_2(%arg0: i32, %arg1: i32) -> (i32, i32) {
    %c0_i32 = arith.constant 0 : i32
    %c0_i32_0 = arith.constant 0 : i32
    return %arg1, %c0_i32 : i32, i32
  }
  func.func @transform_3(%arg0: i32, %arg1: i32) -> (i32, i32) {
    %c0_i32 = arith.constant 0 : i32
    %c0_i32_0 = arith.constant 0 : i32
    %c0_i32_1 = arith.constant 0 : i32
    return %c0_i32, %c0_i32_0 : i32, i32
  }
}

</mosaic_0001>

<bundles_post_ra>
// kernel: tpu_custom_call.1
= control target key start
LH: loop header
LB: loop body
LE: loop exit
PB: predicated region body
PF: predicated region fallthrough
CT: control target
= control target key end

     0   :  { %s1292_s0 = inlined_call_operand.<no memory space> [shape: f32[1], index: 0, kind: input, shape index: {}]   ;;  %s1293_s1 = inlined_call_operand.hbm [shape: f32[16,32], index: 1, kind: input, shape index: {}]   ;;  %s1294_s2 = inlined_call_operand.hbm [shape: f32[16,32], index: 2, kind: input, shape index: {}]   ;;  %s1295_s3 = inlined_call_operand.hbm [shape: f32[1,1], index: 3, kind: output, shape index: {}]  }
   0x1   :  { %8 = sst [smem:[#allocation7]] %s1292_s0 }
   0x2   :  { %9 = vsyncpa [#allocation9], 0 }
   0x3   :  { %11 = vsyncpa [#allocation9 + $0x1], 0 }
   0x4   :  { %12 = vsyncpa [#allocation12], 0 }
   0x5   :  { %14 = vsyncpa [#allocation12 + $0x1], 0 }
   0x6   :  { %15 = vsyncpa [#allocation10], 0  ;;  %s960_s14 = smov 0   ;;  %s962_s15 = smov 0  }
   0x7   :  { %s964_s16 = smov 0   ;;  %s966_s17 = smov 0  }
   0x8   :  { %s968_s18 = smov 0   ;;  %s970_s19 = smov 0  }
   0x9   :  { %s972_s20 = smov 0   ;;  %s974_s0 = smov 0  }
   0xa   :  { %s976_s21 = smov 0   ;;  %s978_s22 = smov 0  }
   0xb   :  { %s980_s23 = smov 0  }
   0xc LB: > { %s1299_s24 = sadd.s32 4294967295, %s922_s23   ;;  %s33_s25 = sadd.s32 1, %s918_s22  ;;  %s922_s23 = sphi %s980_s23, %s21_s23   ;;  %s918_s22 = sphi %s978_s22, %s1325_s22   ;;  %s914_s21 = sphi %s976_s21, %s1324_s21   ;;  %s910_s0 = sphi %s974_s0, %s1323_s0   ;;  %s906_s20 = sphi %s972_s20, %s1322_s20   ;;  %s902_s19 = sphi %s970_s19, %s1321_s19   ;;  %s898_s18 = sphi %s968_s18, %s1320_s18   ;;  %s894_s17 = sphi %s966_s17, %s1319_s17   ;;  %s890_s16 = sphi %s964_s16, %s1318_s16   ;;  %s886_s15 = sphi %s962_s15, %s1317_s15   ;;  %s882_s14 = sphi %s960_s14, %s1316_s14  }
   0xd   : > { %p68_p0 = scmp.ne.s32.totalorder %s902_s19, %s898_s18  ;;  %p1297_p1 = scmp.eq.s32.totalorder %s922_s23, 0 }
   0xe   : > { %p74_p2 = scmp.ne.s32.totalorder %s898_s18, %s894_s17  ;;  %p1021_p3 = scmp.eq.s32.totalorder %s1299_s24, 0 }
   0xf   : > { %p70_p4 = por %p1297_p1, %p68_p0  ;;  %p1296_p5 = scmp.lt.s32.totalorder %s922_s23, 4 }
  0x10   : > { %p1030_p6 = por %p1021_p3, %p74_p2  ;;  %s148_s28 = sand.u32 1, %s902_s19  }
  0x11   : > { %s573_s29 = sshll.u32 %s148_s28, 3  ;;  %s574_s30 = sshll.u32 %s918_s22, 7 }
  0x12   : > { %s1302_s27 = scalar_select %p1030_p6, 1, 0 }
  0x13   : > { %s1039_s6 = scalar_lea.hbm %s1293_s1, %s574_s30  ;;  %s152_s7 = scalar_lea.vmem [#allocation8], %s573_s29 }
  0x14   : > { %s159_s8 = sshll.u32 %s152_s7, 4  ;;  %p1045_p7 = pnand %p1296_p5, %p70_p4  ;;  %s1041_s8 = int_to_ptr.vmem [resolvable:$true] %s159_s8 }
  0x15   : > { %s149_s10 = scalar_lea.sflag [#allocation9], %s148_s28  ;;  %s738_s11 = scalar_lea.hbm %s1039_s6, 128 }
  0x16   : > { %p739_p10 = scmp.ne.s32.totalorder %s1039_s6, %s738_s11  ;;  %p740_p11 = pneg %p1045_p7 }
  0x17   : > { %s743_s17 = scalar_lea.hbm %s1293_s1, 256  ;;  %p744_p0 = scmp.lt.u32.totalorder %s1039_s6, %s1293_s1 }
  0x18   : > { %p741_p12 = pnand %p740_p11, %p739_p10  ;;  %p745_p2 = scmp.lt.u32.totalorder %s743_s17, %s738_s11 }
  0x19   : > { %p747_p5 = scmp.lt.u32.totalorder %s738_s11, %s1039_s6 }
  0x1a   : > { %p742_p13 = pneg %p741_p12  ;;  %p746_p4 = por %p745_p2, %p744_p0 }
  0x1c   : > { %p748_p1 = por %p747_p5, %p746_p4 }
  0x1e   : > { %p749_p8 = pnand %p748_p1, %p742_p13 }
  0x20   : > { %752 = shalt.err (!%p749_p8)
}
  0x21   : > { %s753_s28 = scalar_lea.vmem %s1041_s8, 128  ;;  %s924_s4 = smov [#allocation8]  }
  0x22   : > { %p754_p10 = scmp.ne.s32.totalorder %s1041_s8, %s753_s28  ;;  %s758_s5 = sshll.u32 %s924_s4, 4  ;;  %s759_s5 = int_to_ptr.vmem [resolvable:$false] %s758_s5 }
  0x23   : > { %s760_s7 = scalar_lea.vmem %s759_s5, 256  ;;  %p761_p6 = scmp.lt.s32.totalorder %s1041_s8, %s759_s5 }
  0x24   : > { %p756_p12 = pnand %p754_p10, %p740_p11  ;;  %p762_p0 = scmp.lt.s32.totalorder %s760_s7, %s753_s28 }
  0x26   : > { %p757_p9 = pneg %p756_p12  ;;  %p763_p2 = por %p762_p0, %p761_p6 }
  0x28   : > { %p764_p5 = pnand %p763_p2, %p757_p9 }
  0x2a   : > { %767 = shalt.err (!%p764_p5)
}
  0x2b   : > { %617 = dma.hbm_to_vmem [thread:$0]  (!%p1045_p7), %s1039_s6, 128, %s1041_s8, %s149_s10  }
  0x2c   : > { %p1304_p1 = scmp.lt.s32.totalorder %s922_s23, 5  ;;  %p1305_p6 = scmp.ge.s32.totalorder %s922_s23, 1 }
  0x2d   : > { %s61_s11 = sadd.s32 1, %s902_s19  ;;  %s30_s12 = sadd.s32 1, %s914_s21 }
  0x2e   : > { %p1080_p8 = pnand %p1305_p6, %p1304_p1  ;;  %p31_p9 = scmp.ge.s32.totalorder %s30_s12, 2 }
  0x2f   : > { %s87_s13 = sadd.s32 1, %s890_s16  ;;  %p94_p11 = scmp.ne.s32.totalorder %s890_s16, %s886_s15 }
  0x30   : > { %p100_p13 = scmp.ne.s32.totalorder %s886_s15, %s882_s14  ;;  %s1327_s12 = smov (%p31_p9, %s30_s12), 0 }
  0x31   : > { %s1329_s25 = smov (!%p31_p9, %s33_s25), %s918_s22  ;;  %s84_s6 = ssub.s32 %s914_s21, %s1327_s12 }
  0x32   : > { %s166_s8 = sand.u32 1, %s890_s16   ;;  %p35_p7 = scmp.ge.s32.totalorder %s1329_s25, 2 }
  0x33   : > { %p85_p4 = scmp.eq.s32.totalorder %s84_s6, 0  ;;  %p1307_p10 = scmp.eq.s32.totalorder %s922_s23, 0 }
  0x34   : > { %p1107_p0 = por %p100_p13, %p1021_p3  ;;  %s1331_s25 = smov (%p35_p7, %s1329_s25), 0 }
  0x35   : > { %p1101_p12 = por %p94_p11, %p1307_p10  ;;  %s58_s29 = ssub.s32 %s918_s22, %s1331_s25 }
  0x36   : > { %s1309_s14 = scalar_select %p1107_p0, 1, 0 }
  0x37   : > { %s1114_s17 = scalar_select %p85_p4, %s890_s16, %s87_s13  }
  0x38   : > { %s575_s30 = sshll.u32 %s166_s8, 3  ;;  %p59_p2 = scmp.eq.s32.totalorder %s58_s29, 0 }
  0x39   : > { %s576_s28 = sshll.u32 %s914_s21, 7  ;;  %s170_s4 = scalar_lea.vmem [#allocation11], %s575_s30 }
  0x3a   : > { %s177_s5 = sshll.u32 %s170_s4, 4  ;;  %s1125_s24 = scalar_lea.hbm %s1294_s2, %s576_s28  ;;  %s1127_s5 = int_to_ptr.vmem [resolvable:$true] %s177_s5 }
  0x3b   : > { %s1120_s7 = scalar_select %p59_p2, %s902_s19, %s61_s11  }
  0x3c   : > { %p1310_p3 = scmp.lt.s32.totalorder %s922_s23, 4  ;;  %s167_s11 = scalar_lea.sflag [#allocation12], %s166_s8 }
  0x3d   : > { %s768_s29 = scalar_lea.hbm %s1125_s24, 128  ;;  %s773_s10 = scalar_lea.hbm %s1294_s2, 256 }
  0x3e   : > { %p1133_p5 = pnand %p1310_p3, %p1101_p12  ;;  %p769_p1 = scmp.ne.s32.totalorder %s1125_s24, %s768_s29 }
  0x3f   : > { %p774_p13 = scmp.lt.u32.totalorder %s1125_s24, %s1294_s2  ;;  %p775_p7 = scmp.lt.u32.totalorder %s773_s10, %s768_s29 }
  0x40   : > { %p770_p6 = pneg %p1133_p5  ;;  %p777_p10 = scmp.lt.u32.totalorder %s768_s29, %s1125_s24 }
  0x41   : > { %p776_p4 = por %p775_p7, %p774_p13 }
  0x42   : > { %p771_p9 = pnand %p770_p6, %p769_p1 }
  0x43   : > { %p778_p12 = por %p777_p10, %p776_p4 }
  0x44   : > { %p772_p11 = pneg %p771_p9 }
  0x46   : > { %p779_p2 = pnand %p778_p12, %p772_p11 }
  0x48   : > { %782 = shalt.err (!%p779_p2)
}
  0x49   : > { %s783_s8 = scalar_lea.vmem %s1127_s5, 128  ;;  %s925_s26 = smov [#allocation11]  }
  0x4a   : > { %p784_p3 = scmp.ne.s32.totalorder %s1127_s5, %s783_s8  ;;  %s788_s30 = sshll.u32 %s925_s26, 4  ;;  %s789_s30 = int_to_ptr.vmem [resolvable:$false] %s788_s30 }
  0x4b   : > { %s790_s28 = scalar_lea.vmem %s789_s30, 256  ;;  %p791_p0 = scmp.lt.s32.totalorder %s1127_s5, %s789_s30 }
  0x4c   : > { %p786_p1 = pnand %p784_p3, %p770_p6  ;;  %p792_p13 = scmp.lt.s32.totalorder %s790_s28, %s783_s8 }
  0x4e   : > { %p787_p9 = pneg %p786_p1  ;;  %p793_p7 = por %p792_p13, %p791_p0 }
  0x50   : > { %p794_p4 = pnand %p793_p7, %p787_p9 }
  0x52   : > { %797 = shalt.err (!%p794_p4)
}
  0x53   : > { %620 = dma.hbm_to_vmem [thread:$0]  (!%p1133_p5), %s1125_s24, 128, %s1127_s5, %s167_s11  }
  0x54   : > { %186 = sbr.rel (%p1080_p8) target bundleno = 1525 (0x5f5), region = 32  ;;  %s188_s29 = sand.u32 (!%p1080_p8), 1, %s898_s18  }
  0x55   : > { %s578_s10 = sshll.u32 (!%p1080_p8), %s188_s29, 3  ;;  %s189_s4 = scalar_lea.sflag (!%p1080_p8), [#allocation9], %s188_s29 }
  0x56   : > { %s192_s6 = scalar_lea.vmem (!%p1080_p8), [#allocation8], %s578_s10  ;;  %p1312_p6 = scmp.ne.s32.totalorder (!%p1080_p8), %s1302_s27, 0 }
  0x5b   : > { %869 = dma.done.wait (%p1312_p6), %s189_s4, 128  }
  0x5c   : > { %871 = vsyncadd (%p1312_p6), %s189_s4, 4294967168  ;;  %s197_s13 = sand.u32 1, %s886_s15   ;;  %p1313_p0 = scmp.ne.s32.totalorder %s1309_s14, 0 }
  0x5d   : > { %s579_s8 = sshll.u32 %s197_s13, 3  ;;  %s198_s26 = scalar_lea.sflag [#allocation12], %s197_s13 }
  0x5e   : > { %s201_s24 = scalar_lea.vmem [#allocation11], %s579_s8 }
  0x5f   : > { %873 = dma.done.wait (%p1313_p0), %s198_s26, 128  }
  0x60   : > { %875 = vsyncadd (%p1313_p0), %s198_s26, 4294967168  ;;  %s224_s9 = sld [smem:[#allocation7]]  ;;  %v926_v0 = vmov 0.0   ;;  %vm927_vm0 = vmmov 0   ;;  %vm233_vm1 = vcmask 261120   ;;  %v1174_v1 = vld [vmem:[%s201_s24] sm:$0xff] }
  0x61   : > { %593 = vmatprep.subr.mxu0 %v926_v0  ;;  %595 = vmatprep.mubr.msk.f32.mxu0 %vm927_vm0, %v926_v0  ;;  %s928_s27 = smov 0.0   ;;  %v1178_v2 = vld [vmem:[%s192_s6] sm:$0xff]  ;;  %s929_s11 = smov 4.6051702  }
  0x62   : > { %594 = vmatpush3.xpose.msk.msra.mxu0 %vm233_vm1, %v1174_v1  ;;  %p312_p8 = scmp.eq.s32.totalorder %s910_s0, 0  ;;  %p313_p5 = scmp.eq.s32.totalorder %s906_s20, 0 }
  0x64   : > { %p314_p11 = pnand %p313_p5, %p312_p8 }
  0x65   : > { %596 = vmatmul.mubr.msk.f32.vlgmr.msra.gmra.mrb[0].mxu0 %vm233_vm1, %v1178_v2  ;;  %vm318_vm2 = vcmask (!%p314_p11), 0   ;;  %v930_v10 = vmov (!%p314_p11), 0.0  }
  0x66   : > { %s225_s5 = smax.f32 %s928_s27, %s224_s9  ;;  %319 = vst.msk [vmem:[#allocation6] sm:$0x1] (!%p314_p11), %vm318_vm2, %v930_v10 }
  0x67   : > { %s226_s14 = smin.f32 %s929_s11, %s225_s5 }
  0x68   : > { %v227_v3 = vstv %s226_s14 }
  0x69   : > { %v228_v4 = vmul.f32 1.442695, %v227_v3 }
  0x6b   : > { %723 = vpow2.f32 %v228_v4 }
  0x75   : > { %v724_v5 = vpop.eup %723 }
  0x76   : > { %598 = vpush %v724_v5 }
  0xa7   : > { %s1184_s30 = spop %598 }
  0xa8   : > { %v310_v6 = vstv %s1184_s30 }
 0x133   : > { %317 = sbr.rel (%p314_p11) target bundleno = 314 (0x13a), region = 44 }
 0x138   : > { %v306_v7 = vpop.f32.mrb[0].mxu0 }
 0x139   : > { %v1187_v8 = vmul.f32 %v310_v6, %v306_v7  ;;  %v597_v9 = vpop.f32.mrb[1].mxu0 }
 0x13a PF: > { %p582_p10 = scmp.ne.s32.totalorder %s906_s20, 0 }
 0x13b   : > { %vm323_vm3 = vcmask (!%p582_p10), 7168   ;;  %v931_v11 = vmov (!%p582_p10), -inf   ;;  %v932_v12 = vmov (!%p582_p10), 0.0  }
 0x13c   : > { %322 = sbr.rel (%p582_p10) target bundleno = 323 (0x143), region = 48  ;;  %324 = vst.msk [vmem:[#allocation2] sm:$0xff] (!%p582_p10), %vm323_vm3, %v931_v11  ;;  %325 = vst.msk [vmem:[#allocation3] sm:$0xff] (!%p582_p10), %vm323_vm3, %v932_v12 }
 0x143 PF: > { %vm327_vm4 = vcmask 64512   ;;  %v933_v14 = vmov 0   ;;  %v326_v15 = vld [vmem:[#allocation2] sm:$0xff]  ;;  %vm349_vm5 = vcmask 7168   ;;  %p352_p12 = scmp.eq.s32.totalorder %s906_s20, 1  ;;  %v343_v26 = vld [vmem:[#allocation3] sm:$0xff] }
 0x144   : > { %v1192_v13 = vsel %vm327_vm4, %v1187_v8, -inf  ;;  %725 = vset.pattern.permute.xlu0 %v933_v14  ;;  %p583_p2 = scmp.ne.s32.totalorder %s906_s20, 1 }
 0x145   : > { %329 = vmax.xlane.f32.xlu0 %v1192_v13  ;;  %v372_v43 = vld [vmem:[#allocation6] sm:$0x1] (!%p583_p2)  ;;  %vm374_vm6 = vcmask (!%p583_p2), 0  }
 0x1d2   : > { %v330_v16 = vpop.xlane.xlu0 %329 }
 0x1d3   : > { %v331_v17 = vmax.f32 %v326_v15, %v330_v16 }
 0x1d5   : > { %v332_v18 = vsub.f32 %v326_v15, %v331_v17  ;;  %351 = vst.msk [vmem:[#allocation2] sm:$0xff] %vm349_vm5, %v331_v17  ;;  %337 = vperm.xlu0 %725, %v331_v17  }
 0x1d7   : > { %v333_v24 = vmul.f32 1.442695, %v332_v18 }
 0x1dc   : > { %v356_v32 = vld [vmem:[#allocation2] sm:$0xff] (!%p583_p2) }
 0x254   : > { %v338_v19 = vpop.permute.xlu0 %337 }
 0x255   : > { %v340_v20 = vsub.f32 %v1187_v8, %v338_v19 }
 0x257   : > { %v341_v21 = vmul.f32 1.442695, %v340_v20 }
 0x259   : > { %726 = vpow2.f32 %v341_v21 }
 0x25a   : > { %728 = vpow2.f32 %v333_v24 }
 0x263   : > { %v727_v22 = vpop.eup %726 }
 0x264   : > { %v345_v23 = vsel %vm327_vm4, %v727_v22, 0.0  ;;  %v729_v25 = vpop.eup %728 }
 0x265   : > { %346 = vadd.xlane.f32.xlu1 %v345_v23  ;;  %v344_v27 = vmul.f32 %v729_v25, %v343_v26 }
 0x2ef   : > { %355 = sbr.rel (%p583_p2) target bundleno = 989 (0x3dd), region = 52 }
 0x2f2   : > { %v347_v28 = vpop.xlane.xlu1 %346 }
 0x2f3   : > { %v348_v29 = vadd.f32 %v347_v28, %v344_v27 }
 0x2f5   : > { %350 = vst.msk [vmem:[#allocation3] sm:$0xff] %vm349_vm5, %v348_v29 }
 0x2fc   : > { %v357_v30 = vld [vmem:[#allocation3] sm:$0xff] }
 0x2fd   : > { %730 = vlog2.f32 %v357_v30 }
 0x307   : > { %v731_v31 = vpop.eup %730 }
 0x308   : > { %v359_v33 = vmul.f32 0.6931472, %v731_v31 }
 0x30a   : > { %v360_v34 = vadd.f32 %v359_v33, %v356_v32 }
 0x30c   : > { %v361_v35 = vsel %vm349_vm5, %v360_v34, 0.0 }
 0x30d   : > { %362 = vadd.xlane.f32.xlu0 %v361_v35 }
 0x39a   : > { %v363_v36 = vpop.xlane.xlu0 %362 }
 0x39b   : > { %v364_v37 = vrot.slane %v363_v36, 4 }
 0x39d   : > { %v365_v38 = vadd.f32 %v364_v37, %v363_v36 }
 0x39f   : > { %v366_v39 = vrot.slane %v365_v38, 2 }
 0x3a1   : > { %v367_v40 = vadd.f32 %v366_v39, %v365_v38 }
 0x3a3   : > { %v368_v41 = vrot.slane %v367_v40, 1 }
 0x3a5   : > { %v369_v42 = vadd.f32 %v368_v41, %v367_v40 }
 0x3a7   : > { %600 = vpush %v369_v42 }
 0x3d8   : > { %s601_s28 = spop %600 }
 0x3d9   : > { %v371_v44 = vstv %s601_s28 }
 0x3da   : > { %v373_v45 = vadd.f32 %v372_v43, %v371_v44 }
 0x3dc   : > { %375 = vst.msk [vmem:[#allocation6] sm:$0x1] %vm374_vm6, %v373_v45 }
 0x3dd PF: > { %p584_p3 = scmp.ne.s32.totalorder %s910_s0, 0 }
 0x3de   : > { %vm380_vm7 = vcmask (!%p584_p3), 57344   ;;  %s379_s29 = scalar_lea.vmem (!%p584_p3), [#allocation4], %s906_s20  ;;  %v934_v46 = vmov (!%p584_p3), -inf   ;;  %s382_s10 = scalar_lea.vmem (!%p584_p3), [#allocation5], %s906_s20  ;;  %v935_v47 = vmov (!%p584_p3), 0.0  }
 0x3df   : > { %378 = sbr.rel (%p584_p3) target bundleno = 998 (0x3e6), region = 56  ;;  %381 = vst.msk [vmem:[%s379_s29] sm:$0x1] (!%p584_p3), %vm380_vm7, %v934_v46  ;;  %383 = vst.msk [vmem:[%s382_s10] sm:$0x1] (!%p584_p3), %vm380_vm7, %v935_v47 }
 0x3e6 PF: > { %v386_v48 = vrot.slane %v1192_v13, 4  ;;  %p419_p1 = scmp.eq.s32.totalorder %s910_s0, 1  ;;  %v397_v50 = vlaneseq  ;;  %s1209_s4 = scalar_lea.vmem [#allocation4], %s906_s20  ;;  %vm416_vm8 = vcmask 57344  }
 0x3e7   : > { %v385_v55 = vld [vmem:[%s1209_s4] sm:$0x1]  ;;  %s405_s6 = scalar_lea.vmem [#allocation5], %s906_s20  ;;  %p585_p9 = scmp.ne.s32.totalorder %s910_s0, 1 }
 0x3e8   : > { %v387_v49 = vmax.f32 %v1192_v13, %v386_v48  ;;  %v398_v53 = vshrl.u32 %v397_v50, 7  ;;  %v406_v9 = vld [vmem:[%s405_s6] sm:$0x1]  ;;  %v439_v27 = vld [vmem:[#allocation6] sm:$0x1] (!%p585_p9)  ;;  %vm441_vm9 = vcmask (!%p585_p9), 0  }
 0x3ea   : > { %v388_v51 = vrot.slane %v387_v49, 2  ;;  %v399_v57 = vsub.s32 0, %v398_v53 }
 0x3ec   : > { %v389_v52 = vmax.f32 %v387_v49, %v388_v51 }
 0x3ee   : > { %v390_v54 = vrot.slane %v389_v52, 1 }
 0x3f0   : > { %v391_v56 = vmax.f32 %v389_v52, %v390_v54 }
 0x3f2   : > { %v392_v58 = vmax.f32 %v385_v55, %v391_v56 }
 0x3f4   : > { %v400_v59 = vrot.slane %v392_v58, %v399_v57  ;;  %418 = vst.msk [vmem:[%s1209_s4] sm:$0x1] %vm416_vm8, %v392_v58  ;;  %v393_v62 = vsub.f32 %v385_v55, %v392_v58 }
 0x3f6   : > { %v402_v60 = vsub.f32 %v1187_v8, %v400_v59  ;;  %v394_v63 = vmul.f32 1.442695, %v393_v62 }
 0x3f8   : > { %v403_v61 = vmul.f32 1.442695, %v402_v60 }
 0x3fa   : > { %732 = vpow2.f32 %v403_v61 }
 0x3fb   : > { %734 = vpow2.f32 %v394_v63  ;;  %v423_v16 = vld [vmem:[%s1209_s4] sm:$0x1] (!%p585_p9) }
 0x404   : > { %v733_v0 = vpop.eup %732 }
 0x405   : > { %v408_v3 = vsel %vm327_vm4, %v733_v0, 0.0  ;;  %v735_v7 = vpop.eup %734 }
 0x406   : > { %v409_v4 = vrot.slane %v408_v3, 4  ;;  %v407_v11 = vmul.f32 %v735_v7, %v406_v9 }
 0x408   : > { %v410_v5 = vadd.f32 %v409_v4, %v408_v3 }
 0x40a   : > { %v411_v6 = vrot.slane %v410_v5, 2 }
 0x40c   : > { %v412_v10 = vadd.f32 %v411_v6, %v410_v5 }
 0x40e   : > { %v413_v12 = vrot.slane %v412_v10, 1  ;;  %422 = sbr.rel (%p585_p9) target bundleno = 1276 (0x4fc), region = 60 }
 0x410   : > { %v414_v13 = vadd.f32 %v413_v12, %v412_v10 }
 0x412   : > { %v415_v14 = vadd.f32 %v414_v13, %v407_v11 }
 0x414   : > { %417 = vst.msk [vmem:[%s405_s6] sm:$0x1] %vm416_vm8, %v415_v14 }
 0x41b   : > { %v424_v8 = vld [vmem:[%s405_s6] sm:$0x1] }
 0x41c   : > { %736 = vlog2.f32 %v424_v8 }
 0x426   : > { %v737_v15 = vpop.eup %736 }
 0x427   : > { %v426_v17 = vmul.f32 0.6931472, %v737_v15 }
 0x429   : > { %v427_v18 = vadd.f32 %v426_v17, %v423_v16 }
 0x42b   : > { %v428_v19 = vsel %vm416_vm8, %v427_v18, 0.0 }
 0x42c   : > { %429 = vadd.xlane.f32.xlu0 %v428_v19 }
 0x4b9   : > { %v430_v20 = vpop.xlane.xlu0 %429 }
 0x4ba   : > { %v431_v21 = vrot.slane %v430_v20, 4 }
 0x4bc   : > { %v432_v22 = vadd.f32 %v431_v21, %v430_v20 }
 0x4be   : > { %v433_v23 = vrot.slane %v432_v22, 2 }
 0x4c0   : > { %v434_v24 = vadd.f32 %v433_v23, %v432_v22 }
 0x4c2   : > { %v435_v25 = vrot.slane %v434_v24, 1 }
 0x4c4   : > { %v436_v26 = vadd.f32 %v435_v25, %v434_v24 }
 0x4c6   : > { %602 = vpush %v436_v26 }
 0x4f7   : > { %s603_s13 = spop %602 }
 0x4f8   : > { %v438_v28 = vstv %s603_s13 }
 0x4f9   : > { %v440_v29 = vadd.f32 %v439_v27, %v438_v28 }
 0x4fb   : > { %442 = vst.msk [vmem:[#allocation6] sm:$0x1] %vm441_vm9, %v440_v29 }
 0x4fc PF: > { %p586_p13 = scmp.ne.s32.totalorder %s910_s0, %s906_s20 }
 0x4fd   : > { %v447_v30 = vmul.f32 (!%p586_p13), %v1174_v1, %v1178_v2  ;;  %s460_s8 = smul.f32 (!%p586_p13), -2.0, %s1184_s30  ;;  %vm464_vm10 = vcmask (!%p586_p13), 0  }
 0x4fe   : > { %446 = sbr.rel (%p586_p13) target bundleno = 1490 (0x5d2), region = 64 }
 0x4ff   : > { %v448_v31 = vsel (!%p586_p13), %vm233_vm1, %v447_v30, 0.0  ;;  %v461_v39 = vstv (!%p586_p13), %s460_s8 }
 0x500   : > { %449 = vadd.xlane.f32.xlu0 (!%p586_p13), %v448_v31 }
 0x502   : > { %v459_v41 = vld [vmem:[#allocation6] sm:$0x1] (!%p586_p13) }
 0x58d   : > { %v450_v32 = vpop.xlane.xlu0 %449 }
 0x58e   : > { %v451_v33 = vrot.slane %v450_v32, 4 }
 0x590   : > { %v452_v34 = vadd.f32 %v451_v33, %v450_v32 }
 0x592   : > { %v453_v35 = vrot.slane %v452_v34, 2 }
 0x594   : > { %v454_v36 = vadd.f32 %v453_v35, %v452_v34 }
 0x596   : > { %v455_v37 = vrot.slane %v454_v36, 1 }
 0x598   : > { %v456_v38 = vadd.f32 %v455_v37, %v454_v36 }
 0x59a   : > { %604 = vpush %v456_v38 }
 0x5cb   : > { %s605_s26 = spop %604 }
 0x5cc   : > { %v458_v40 = vstv %s605_s26 }
 0x5cd   : > { %v462_v42 = vmul.f32 %v461_v39, %v458_v40 }
 0x5cf   : > { %v463_v43 = vadd.f32 %v462_v42, %v459_v41 }
 0x5d1   : > { %465 = vst.msk [vmem:[#allocation6] sm:$0x1] %vm464_vm10, %v463_v43 }
 0x5d2 PF: > { %p466_p7 = pnand %p419_p1, %p352_p12 }
 0x5d3   : > { %vm472_vm11 = vcmask (!%p466_p7), 0  }
 0x5d4   : > { %469 = sbr.rel (%p466_p7) target bundleno = 1500 (0x5dc), region = 68 }
 0x5d8   : > { %v470_v1 = vld [vmem:[#allocation6] sm:$0x1] (!%p466_p7) }
 0x5d9   : > { %v471_v2 = vmul.f32 (!%p466_p7), 0.03125, %v470_v1 }
 0x5db   : > { %473 = vst.msk [vmem:[#allocation13] sm:$0x1] %vm472_vm11, %v471_v2 }
 0x5dc PF: > { %s1314_s24 = sadd.s32 4294967295, %s922_s23   ;;  %s936_s27 = smov [#allocation13]  }
 0x5dd   : > { %p1233_p4 = scmp.eq.s32.totalorder %s1314_s24, 3  ;;  %s481_s5 = sshll.u32 %s936_s27, 4  ;;  %s482_s5 = int_to_ptr.vmem [resolvable:$true] %s481_s5 }
 0x5de   : > { %s798_s20 = scalar_lea.vmem %s482_s5, 16  ;;  %s804_s0 = scalar_lea.vmem %s482_s5, 32 }
 0x5df   : > { %p799_p6 = scmp.ne.s32.totalorder %s482_s5, %s798_s20  ;;  %p805_p5 = scmp.lt.s32.totalorder %s482_s5, %s482_s5 }
 0x5e0   : > { %p806_p11 = scmp.lt.s32.totalorder %s804_s0, %s798_s20 }
 0x5e1   : > { %p800_p0 = pnand %p799_p6, %p1233_p4 }
 0x5e2   : > { %p807_p10 = por %p806_p11, %p805_p5 }
 0x5e3   : > { %p801_p8 = pneg %p800_p0 }
 0x5e5   : > { %p808_p12 = pnand %p807_p10, %p801_p8 }
 0x5e7   : > { %811 = shalt.err (!%p808_p12)
}
 0x5e8   : > { %s812_s30 = scalar_lea.hbm %s1295_s3, 16 }
 0x5e9   : > { %p813_p2 = scmp.ne.s32.totalorder %s1295_s3, %s812_s30  ;;  %p818_p9 = scmp.lt.u32.totalorder %s812_s30, %s1295_s3 }
 0x5eb   : > { %p814_p3 = pnand %p813_p2, %p1233_p4 }
 0x5ed   : > { %p815_p1 = pneg %p814_p3 }
 0x5ef   : > { %p820_p13 = pnand %p818_p9, %p815_p1 }
 0x5f1   : > { %823 = shalt.err (!%p820_p13)
}
 0x5f2   : > { %611 = dma.vmem_to_hbm [thread:$0]  (%p1233_p4), %s482_s5, 16, %s1295_s3, [#allocation10]  }
 0x5f3   : > { %877 = dma.done.wait (%p1233_p4), [#allocation10], 16  }
 0x5f4   : > { %879 = vsyncadd (%p1233_p4), [#allocation10], 4294967280 }
 0x5f5 PF: > { %s21_s23 = sadd.s32 1, %s922_s23   ;;  %s1316_s14 = smov %s886_s15 }
 0x5f6   : > { %p18_p7 = scmp.ge.s32.totalorder %s21_s23, 6   ;;  %s1317_s15 = smov %s890_s16 }
 0x5f7   : > { %s1318_s16 = smov %s1114_s17  ;;  %s1319_s17 = smov %s898_s18 }
 0x5f8   : > { %s1320_s18 = smov %s902_s19  ;;  %s1321_s19 = smov %s1120_s7 }
 0x5f9   : > { %s1322_s20 = smov %s914_s21  ;;  %s1323_s0 = smov %s918_s22 }
 0x5fa   : > { %s1324_s21 = smov %s1327_s12  ;;  %s1325_s22 = smov %s1331_s25 }
 0x5fb   :  { %20 = sbr.rel (!%p18_p7) target bundleno = 12 (0xc), region = 114 }
 0x602   :  { %494 = vsyncpa [#allocation9], 1 }
 0x603   :  { %496 = vsyncpa [#allocation9 + $0x1], 1 }
 0x604   :  { %497 = vsyncpa [#allocation12], 1 }
 0x605   :  { %499 = vsyncpa [#allocation12 + $0x1], 1 }
 0x606   :  { %500 = vsyncpa [#allocation10], 1 }
 0x607   :  { %502 = vsyncpa [#allocation10 + $0x1], 1 }

</bundles_post_ra>
